<compile_context>
chip_gen: v7x
topology: tpu7x:2x2x1
jax: 0.10.0
libtpu: 0.0.40
codegen_flags: <defaults>
</compile_context>

<pallas_src>
import math

import jax
import jax.numpy as jnp
import numpy as np
from jax import lax
from jax.experimental import pallas as pl
from jax.experimental.pallas import tpu as pltpu


def _make_kernel(inv_temperature, has_kmask, has_qmask, has_mask, return_attn):
    inv_t = float(inv_temperature)  # Python float -> jaxpr literal, not a const

    def kernel(*refs):
        it = iter(refs)
        q_ref = next(it)                              # (tq, D)
        k_ref = next(it)                              # (Lk, D)
        v_ref = next(it)                              # (Lk, Dv)
        kmask_ref = next(it) if has_kmask else None   # (1, Lk)   original dtype
        qmask_ref = next(it) if has_qmask else None   # (tq, 1)   original dtype
        mask_ref = next(it) if has_mask else None     # (tq, Lk)  original dtype
        out_ref = next(it)                            # (tq, Dv)
        attn_ref = next(it) if return_attn else None  # (tq, Lk)

        # Scale Q (tq x D) instead of the (tq x Lk) scores: ~Lk/D fewer VPU ops.
        q = (q_ref[...].astype(jnp.float32) * inv_t).astype(q_ref.dtype)
        k = k_ref[...]
        v = v_ref[...]

        # Q @ K^T as an NT contraction (no materialized K transpose), f32 acc.
        s = lax.dot_general(q, k, (((1,), (1,)), ((), ())),
                            preferred_element_type=jnp.float32)

        # Pre-softmax masking, fused into one select.  `> 0` matches the
        # reference semantics for 0/1 masks.
        valid = None
        if has_kmask:
            valid = kmask_ref[...] > 0
        if has_mask:
            mvalid = mask_ref[...] > 0
            valid = mvalid if valid is None else (valid & mvalid)
        if valid is not None:
            s = jnp.where(valid, s, -jnp.inf)

        # Row softmax over keys (f32).  Like the PyTorch reference, a fully
        # masked row produces NaN (max = -inf); intentionally not guarded.
        m = jnp.max(s, axis=-1, keepdims=True)
        p = jnp.exp(s - m)
        denom = jnp.sum(p, axis=-1, keepdims=True)
        r = pl.reciprocal(denom, approx=True)
        if jnp.dtype(out_ref.dtype).itemsize >= 4:
            # One Newton step -> ~f32 accuracy; skipped for bf16 outputs where
            # the approx EUP reciprocal already exceeds output precision.
            r = r * (2.0 - denom * r)
        attn = p * r

        if has_qmask:
            attn = jnp.where(qmask_ref[...] > 0, attn, 0.0)

        # Single downcast reused for the MXU operand and (usually) the store.
        attn_op = attn.astype(v.dtype)
        out = jnp.dot(attn_op, v, preferred_element_type=jnp.float32)
        out_ref[...] = out.astype(out_ref.dtype)
        if return_attn:
            if attn_ref.dtype == v.dtype:
                attn_ref[...] = attn_op
            else:
                attn_ref[...] = attn.astype(attn_ref.dtype)

    return kernel


def _physical_vmem_bytes():
    try:
        return int(pltpu.get_tpu_info().vmem_capacity_bytes)
    except Exception:
        return 64 << 20  # conservative (v7x per-TensorCore)


def _footprint_bytes(tq, Lk, D, Dv, isz, attn_isz, mask_iszs, return_attn):
    """Per-grid-step VMEM footprint: double-buffered blocks + f32 temps."""
    kmask_isz, qmask_isz, mask_isz = mask_iszs
    b = 2 * (tq * D + Lk * D + Lk * Dv + tq * Dv) * isz      # q/k/v/out, 2x buf
    if return_attn:
        b += 2 * tq * Lk * attn_isz                          # attn writeback
    if kmask_isz:
        b += 2 * Lk * kmask_isz
    if qmask_isz:
        b += 2 * tq * qmask_isz
    if mask_isz:
        b += 2 * tq * Lk * mask_isz
    b += 3 * tq * Lk * 4                                     # f32 s/p/attn temps
    return b


def _choose_q_tile(Lq, Lk, D, Dv, isz, attn_isz, mask_iszs, return_attn, budget):
    cands = [Lq] + [c for c in (2048, 1024, 512, 256, 128, 64, 32, 16, 8)
                    if c < Lq]
    for tq in cands:
        if _footprint_bytes(tq, Lk, D, Dv, isz, attn_isz, mask_iszs,
                            return_attn) <= budget:
            return tq
    return cands[-1]


def scaled_dot_product_attention(query, key, value, temperature,
                                 query_mask=None, key_mask=None, mask=None,
                                 return_attn=True):
    """Returns (attn_value, attn) matching the PyTorch module's forward.

    If `return_attn=False`, the (B, Lq, Lk) attention-weights writeback is
    skipped entirely (kernel variant with no attn output) and `attn` is None.
    """
    B, Lq, D = query.shape
    Bk, Lk, Dk = key.shape
    Bv, Lkv, Dv = value.shape
    assert B == Bk == Bv and D == Dk and Lk == Lkv

    has_kmask = key_mask is not None
    has_qmask = query_mask is not None
    has_mask = mask is not None
    if has_mask:
        assert mask.shape == (B, Lq, Lk)

    isz = jnp.dtype(query.dtype).itemsize
    attn_isz = isz  # attn weights returned in the input dtype
    mask_iszs = (
        jnp.dtype(key_mask.dtype).itemsize if has_kmask else 0,
        jnp.dtype(query_mask.dtype).itemsize if has_qmask else 0,
        jnp.dtype(mask.dtype).itemsize if has_mask else 0,
    )

    phys_vmem = _physical_vmem_bytes()
    tile_budget = int(phys_vmem * 0.70)  # headroom for compiler scratch
    tq = _choose_q_tile(Lq, Lk, D, Dv, isz, attn_isz, mask_iszs, return_attn,
                        tile_budget)
    nq = pl.cdiv(Lq, tq)

    inputs = [query, key, value]
    in_specs = [
        pl.BlockSpec((None, tq, D), lambda b, qi: (b, qi, 0)),   # query tile
        pl.BlockSpec((None, Lk, D), lambda b, qi: (b, 0, 0)),    # full key
        pl.BlockSpec((None, Lk, Dv), lambda b, qi: (b, 0, 0)),   # full value
    ]
    # Masks go in unconverted (original dtype); compare happens in-kernel.
    if has_kmask:
        inputs.append(key_mask.reshape(B, 1, Lk))
        in_specs.append(pl.BlockSpec((None, 1, Lk), lambda b, qi: (b, 0, 0)))
    if has_qmask:
        inputs.append(query_mask.reshape(B, Lq, 1))
        in_specs.append(pl.BlockSpec((None, tq, 1), lambda b, qi: (b, qi, 0)))
    if has_mask:
        inputs.append(mask)
        in_specs.append(pl.BlockSpec((None, tq, Lk), lambda b, qi: (b, qi, 0)))

    out_specs = [pl.BlockSpec((None, tq, Dv), lambda b, qi: (b, qi, 0))]
    out_shapes = [jax.ShapeDtypeStruct((B, Lq, Dv), query.dtype)]
    if return_attn:
        out_specs.append(pl.BlockSpec((None, tq, Lk), lambda b, qi: (b, qi, 0)))
        out_shapes.append(jax.ShapeDtypeStruct((B, Lq, Lk), query.dtype))

    footprint = _footprint_bytes(tq, Lk, D, Dv, isz, attn_isz, mask_iszs,
                                 return_attn)
    vmem_limit = int(min(phys_vmem - (4 << 20),
                         max(footprint + (8 << 20), 32 << 20)))
    vmem_limit = max(vmem_limit, 16 << 20)

    kernel = _make_kernel(1.0 / float(temperature), has_kmask, has_qmask,
                          has_mask, return_attn)

    grid_spec = pltpu.PrefetchScalarGridSpec(
        num_scalar_prefetch=0,
        grid=(B, nq),
        in_specs=in_specs,
        out_specs=out_specs,
    )

    result = pl.pallas_call(
        kernel,
        out_shape=tuple(out_shapes),
        grid_spec=grid_spec,
        compiler_params=pltpu.CompilerParams(
            dimension_semantics=("parallel", "parallel"),
            vmem_limit_bytes=vmem_limit),
    )(*inputs)

    if return_attn:
        attn_value, attn = result
        return attn_value, attn
    attn_value = result[0] if isinstance(result, (tuple, list)) else result
    return attn_value, None


def _reference(query, key, value, temperature, query_mask, key_mask, mask):
    s = jnp.einsum("bqd,bkd->bqk", query, key) / temperature
    if key_mask is not None:
        s = jnp.where(key_mask[:, None, :] > 0, s, -jnp.inf)
    if mask is not None:
        s = jnp.where(mask > 0, s, -jnp.inf)
    attn = jax.nn.softmax(s, axis=2)
    if query_mask is not None:
        attn = jnp.where(query_mask[:, :, None] > 0, attn, 0.0)
    return jnp.einsum("bqk,bkd->bqd", attn, value), attn


if __name__ == "__main__":
    key0 = jax.random.PRNGKey(0)
    B, Lq, Lk, D, Dv = 2, 8, 8, 32, 32
    temperature = math.sqrt(D)

    k1, k2, k3 = jax.random.split(key0, 3)
    query = jax.random.normal(k1, (B, Lq, D), dtype=jnp.float32)
    keys = jax.random.normal(k2, (B, Lk, D), dtype=jnp.float32)
    value = jax.random.normal(k3, (B, Lk, Dv), dtype=jnp.float32)

    # Deterministic masks (valid prefixes / one dense-masked key), built in-script.
    key_mask = (jnp.arange(Lk)[None, :]
                < jnp.array([[Lk], [Lk - 2]])).astype(jnp.float32)
    query_mask = (jnp.arange(Lq)[None, :]
                  < jnp.array([[Lq], [Lq - 1]])).astype(jnp.float32)
    mask = jnp.ones((B, Lq, Lk), jnp.float32).at[:, :, Lk - 1].set(0.0)

    # Masked variant (all three masks, attn weights returned).
    out_m, attn_m = scaled_dot_product_attention(
        query, keys, value, temperature,
        query_mask=query_mask, key_mask=key_mask, mask=mask)
    # Unmasked variant (no mask DMAs at all).
    out_u, attn_u = scaled_dot_product_attention(query, keys, value, temperature)
    # No-attn-writeback variant (fast path when weights aren't consumed).
    out_n, attn_n = scaled_dot_product_attention(query, keys, value, temperature,
                                                 return_attn=False)
    jax.block_until_ready((out_m, attn_m, out_u, attn_u, out_n))
    assert attn_n is None

    ref_out_m, ref_attn_m = _reference(query, keys, value, temperature,
                                       query_mask, key_mask, mask)
    ref_out_u, ref_attn_u = _reference(query, keys, value, temperature,
                                       None, None, None)

    np.testing.assert_allclose(np.asarray(attn_m), np.asarray(ref_attn_m),
                               rtol=1e-4, atol=1e-5)
    np.testing.assert_allclose(np.asarray(out_m), np.asarray(ref_out_m),
                               rtol=1e-4, atol=1e-5)
    np.testing.assert_allclose(np.asarray(attn_u), np.asarray(ref_attn_u),
                               rtol=1e-4, atol=1e-5)
    np.testing.assert_allclose(np.asarray(out_u), np.asarray(ref_out_u),
                               rtol=1e-4, atol=1e-5)
    np.testing.assert_allclose(np.asarray(out_n), np.asarray(ref_out_u),
                               rtol=1e-4, atol=1e-5)

    print("KERNEL_OK")
</pallas_src>

<mosaic_0001>
module attributes {stable_mosaic.version = 11 : i64} {
  func.func @kernel(%arg0: i32, %arg1: i32, %arg2: memref<1x8x32xf32, #tpu.memory_space<vmem>>, %arg3: memref<1x8x32xf32, #tpu.memory_space<vmem>>, %arg4: memref<1x8x32xf32, #tpu.memory_space<vmem>>, %arg5: memref<1x1x8xf32, #tpu.memory_space<vmem>>, %arg6: memref<1x8x1xf32, #tpu.memory_space<vmem>>, %arg7: memref<1x8x8xf32, #tpu.memory_space<vmem>>, %arg8: memref<1x8x32xf32, #tpu.memory_space<vmem>>, %arg9: memref<1x8x8xf32, #tpu.memory_space<vmem>>) attributes {dimension_semantics = [#tpu.dimension_semantics<parallel>, #tpu.dimension_semantics<parallel>], iteration_bounds = array<i64: 2, 1>, scalar_prefetch = 0 : i64, scratch_operands = 0 : i64, tpu.core_type = #tpu.core_type<tc>, window_params = [{transform_indices = @transform_0, window_bounds = array<i64: 1, 8, 32>}, {transform_indices = @transform_1, window_bounds = array<i64: 1, 8, 32>}, {transform_indices = @transform_2, window_bounds = array<i64: 1, 8, 32>}, {transform_indices = @transform_3, window_bounds = array<i64: 1, 1, 8>}, {transform_indices = @transform_4, window_bounds = array<i64: 1, 8, 1>}, {transform_indices = @transform_5, window_bounds = array<i64: 1, 8, 8>}, {transform_indices = @transform_6, window_bounds = array<i64: 1, 8, 32>}, {transform_indices = @transform_7, window_bounds = array<i64: 1, 8, 8>}]} {
    %c0 = arith.constant 0 : index
    %c0_0 = arith.constant 0 : index
    %c0_1 = arith.constant 0 : index
    %0 = vector.load %arg2[%c0, %c0_0, %c0_1] : memref<1x8x32xf32, #tpu.memory_space<vmem>>, vector<1x8x32xf32>
    %1 = vector.shape_cast %0 : vector<1x8x32xf32> to vector<8x32xf32>
    %cst = arith.constant 0.176776692 : f32
    %2 = vector.broadcast %cst : f32 to vector<8x32xf32>
    %3 = arith.mulf %1, %2 : vector<8x32xf32>
    %c0_2 = arith.constant 0 : index
    %c0_3 = arith.constant 0 : index
    %c0_4 = arith.constant 0 : index
    %4 = vector.load %arg3[%c0_2, %c0_3, %c0_4] : memref<1x8x32xf32, #tpu.memory_space<vmem>>, vector<1x8x32xf32>
    %5 = vector.shape_cast %4 : vector<1x8x32xf32> to vector<8x32xf32>
    %c0_5 = arith.constant 0 : index
    %c0_6 = arith.constant 0 : index
    %c0_7 = arith.constant 0 : index
    %6 = vector.load %arg4[%c0_5, %c0_6, %c0_7] : memref<1x8x32xf32, #tpu.memory_space<vmem>>, vector<1x8x32xf32>
    %7 = vector.shape_cast %6 : vector<1x8x32xf32> to vector<8x32xf32>
    %cst_8 = arith.constant dense<0.000000e+00> : vector<8x8xf32>
    %8 = tpu.matmul %3, %5, %cst_8 {dimension_numbers = #tpu.dot_dimension_numbers<[1], [1], [0], [0], [0, 0, 1, 0], [], []>} : vector<8x32xf32>, vector<8x32xf32>, vector<8x8xf32> -> vector<8x8xf32>
    %c0_9 = arith.constant 0 : index
    %c0_10 = arith.constant 0 : index
    %c0_11 = arith.constant 0 : index
    %9 = vector.load %arg5[%c0_9, %c0_10, %c0_11] : memref<1x1x8xf32, #tpu.memory_space<vmem>>, vector<1x1x8xf32>
    %10 = vector.shape_cast %9 : vector<1x1x8xf32> to vector<1x8xf32>
    %cst_12 = arith.constant 0.000000e+00 : f32
    %11 = vector.broadcast %cst_12 : f32 to vector<1x8xf32>
    %12 = arith.cmpf ogt, %10, %11 : vector<1x8xf32>
    %c0_13 = arith.constant 0 : index
    %c0_14 = arith.constant 0 : index
    %c0_15 = arith.constant 0 : index
    %13 = vector.load %arg7[%c0_13, %c0_14, %c0_15] : memref<1x8x8xf32, #tpu.memory_space<vmem>>, vector<1x8x8xf32>
    %14 = vector.shape_cast %13 : vector<1x8x8xf32> to vector<8x8xf32>
    %cst_16 = arith.constant 0.000000e+00 : f32
    %15 = vector.broadcast %cst_16 : f32 to vector<8x8xf32>
    %16 = arith.cmpf ogt, %14, %15 : vector<8x8xf32>
    %17 = vector.broadcast %12 : vector<1x8xi1> to vector<8x8xi1>
    %18 = arith.andi %17, %16 : vector<8x8xi1>
    %cst_17 = arith.constant 0xFF800000 : f32
    %19 = vector.broadcast %cst_17 : f32 to vector<8x8xf32>
    %20 = arith.select %18, %8, %19 : vector<8x8xi1>, vector<8x8xf32>
    %cst_18 = arith.constant dense<0xFF800000> : vector<8xf32>
    %21 = vector.multi_reduction <maximumf>, %20, %cst_18 [1] : vector<8x8xf32> to vector<8xf32>
    %22 = vector.shape_cast %21 : vector<8xf32> to vector<8x1xf32>
    %23 = vector.broadcast %22 : vector<8x1xf32> to vector<8x8xf32>
    %24 = arith.subf %20, %23 : vector<8x8xf32>
    %25 = math.exp %24 : vector<8x8xf32>
    %cst_19 = arith.constant dense<0.000000e+00> : vector<8xf32>
    %26 = vector.multi_reduction <add>, %25, %cst_19 [1] : vector<8x8xf32> to vector<8xf32>
    %27 = vector.shape_cast %26 : vector<8xf32> to vector<8x1xf32>
    %28 = tpu.reciprocal %27 {approx = true} : vector<8x1xf32> -> vector<8x1xf32>
    %29 = arith.mulf %27, %28 : vector<8x1xf32>
    %cst_20 = arith.constant 2.000000e+00 : f32
    %30 = vector.broadcast %cst_20 : f32 to vector<8x1xf32>
    %31 = arith.subf %30, %29 : vector<8x1xf32>
    %32 = arith.mulf %28, %31 : vector<8x1xf32>
    %33 = vector.broadcast %32 : vector<8x1xf32> to vector<8x8xf32>
    %34 = arith.mulf %25, %33 : vector<8x8xf32>
    %c0_21 = arith.constant 0 : index
    %c0_22 = arith.constant 0 : index
    %c0_23 = arith.constant 0 : index
    %35 = vector.load %arg6[%c0_21, %c0_22, %c0_23] : memref<1x8x1xf32, #tpu.memory_space<vmem>>, vector<1x8x1xf32>
    %36 = vector.shape_cast %35 : vector<1x8x1xf32> to vector<8x1xf32>
    %cst_24 = arith.constant 0.000000e+00 : f32
    %37 = vector.broadcast %cst_24 : f32 to vector<8x1xf32>
    %38 = arith.cmpf ogt, %36, %37 : vector<8x1xf32>
    %cst_25 = arith.constant 0.000000e+00 : f32
    %39 = vector.shape_cast %38 : vector<8x1xi1> to vector<8x1xi1>
    %40 = vector.broadcast %39 : vector<8x1xi1> to vector<8x8xi1>
    %41 = vector.broadcast %cst_25 : f32 to vector<8x8xf32>
    %42 = arith.select %40, %34, %41 : vector<8x8xi1>, vector<8x8xf32>
    %cst_26 = arith.constant dense<0.000000e+00> : vector<8x32xf32>
    %43 = tpu.matmul %42, %7, %cst_26 {dimension_numbers = #tpu.dot_dimension_numbers<[1], [0], [0], [1], [0, 0, 1, 1], [], []>} : vector<8x8xf32>, vector<8x32xf32>, vector<8x32xf32> -> vector<8x32xf32>
    %c0_27 = arith.constant 0 : index
    %c0_28 = arith.constant 0 : index
    %c0_29 = arith.constant 0 : index
    %44 = vector.load %arg8[%c0_27, %c0_28, %c0_29] : memref<1x8x32xf32, #tpu.memory_space<vmem>>, vector<1x8x32xf32>
    %45 = vector.shape_cast %44 : vector<1x8x32xf32> to vector<8x32xf32>
    %46 = vector.shape_cast %43 : vector<8x32xf32> to vector<1x8x32xf32>
    tpu.vector_store %arg8[%c0_27, %c0_28, %c0_29], %46 {strides = array<i32>} : memref<1x8x32xf32, #tpu.memory_space<vmem>>, vector<1x8x32xf32>,
    %c0_30 = arith.constant 0 : index
    %c0_31 = arith.constant 0 : index
    %c0_32 = arith.constant 0 : index
    %47 = vector.load %arg9[%c0_30, %c0_31, %c0_32] : memref<1x8x8xf32, #tpu.memory_space<vmem>>, vector<1x8x8xf32>
    %48 = vector.shape_cast %47 : vector<1x8x8xf32> to vector<8x8xf32>
    %49 = vector.shape_cast %42 : vector<8x8xf32> to vector<1x8x8xf32>
    tpu.vector_store %arg9[%c0_30, %c0_31, %c0_32], %49 {strides = array<i32>} : memref<1x8x8xf32, #tpu.memory_space<vmem>>, vector<1x8x8xf32>,
    return
  }
  func.func @transform_0(%arg0: i32, %arg1: i32) -> (i32, i32, i32) {
    %c0_i32 = arith.constant 0 : i32
    %c0_i32_0 = arith.constant 0 : i32
    return %arg0, %arg1, %c0_i32 : i32, i32, i32
  }
  func.func @transform_1(%arg0: i32, %arg1: i32) -> (i32, i32, i32) {
    %c0_i32 = arith.constant 0 : i32
    %c0_i32_0 = arith.constant 0 : i32
    %c0_i32_1 = arith.constant 0 : i32
    return %arg0, %c0_i32, %c0_i32_0 : i32, i32, i32
  }
  func.func @transform_2(%arg0: i32, %arg1: i32) -> (i32, i32, i32) {
    %c0_i32 = arith.constant 0 : i32
    %c0_i32_0 = arith.constant 0 : i32
    %c0_i32_1 = arith.constant 0 : i32
    return %arg0, %c0_i32, %c0_i32_0 : i32, i32, i32
  }
  func.func @transform_3(%arg0: i32, %arg1: i32) -> (i32, i32, i32) {
    %c0_i32 = arith.constant 0 : i32
    %c0_i32_0 = arith.constant 0 : i32
    %c0_i32_1 = arith.constant 0 : i32
    return %arg0, %c0_i32, %c0_i32_0 : i32, i32, i32
  }
  func.func @transform_4(%arg0: i32, %arg1: i32) -> (i32, i32, i32) {
    %c0_i32 = arith.constant 0 : i32
    %c0_i32_0 = arith.constant 0 : i32
    return %arg0, %arg1, %c0_i32 : i32, i32, i32
  }
  func.func @transform_5(%arg0: i32, %arg1: i32) -> (i32, i32, i32) {
    %c0_i32 = arith.constant 0 : i32
    %c0_i32_0 = arith.constant 0 : i32
    return %arg0, %arg1, %c0_i32 : i32, i32, i32
  }
  func.func @transform_6(%arg0: i32, %arg1: i32) -> (i32, i32, i32) {
    %c0_i32 = arith.constant 0 : i32
    %c0_i32_0 = arith.constant 0 : i32
    return %arg0, %arg1, %c0_i32 : i32, i32, i32
  }
  func.func @transform_7(%arg0: i32, %arg1: i32) -> (i32, i32, i32) {
    %c0_i32 = arith.constant 0 : i32
    %c0_i32_0 = arith.constant 0 : i32
    return %arg0, %arg1, %c0_i32 : i32, i32, i32
  }
}

</mosaic_0001>

<bundles_post_ra>
// kernel: tpu_custom_call.1
= control target key start
LH: loop header
LB: loop body
LE: loop exit
PB: predicated region body
PF: predicated region fallthrough
CT: control target
= control target key end

     0   :  { %s1598_s0 = inlined_call_operand.vmem [shape: f32[2,8,32], index: 0, kind: input, shape index: {}]   ;;  %s1599_s1 = inlined_call_operand.hbm [shape: f32[2,8,32], index: 1, kind: input, shape index: {}]   ;;  %s1600_s2 = inlined_call_operand.hbm [shape: f32[2,8,32], index: 2, kind: input, shape index: {}]   ;;  %s1601_s3 = inlined_call_operand.hbm [shape: f32[2,1,8], index: 3, kind: input, shape index: {}]   ;;  %s1602_s4 = inlined_call_operand.vmem [shape: f32[2,8,1], index: 4, kind: input, shape index: {}]   ;;  %s1603_s5 = inlined_call_operand.vmem [shape: f32[2,8,8], index: 5, kind: input, shape index: {}]   ;;  %s1604_s6 = inlined_call_operand.hbm [shape: f32[2,8,32], index: 6, kind: output, shape index: {0}]   ;;  %s1605_s7 = inlined_call_operand.hbm [shape: f32[2,8,8], index: 7, kind: output, shape index: {1}]  }
   0x1   :  { %1616 = sst [smem:[#allocation20_spill]] %s1600_s2 }
   0x2   :  { %13 = vsyncpa [#allocation3], 0 }
   0x3   :  { %15 = vsyncpa [#allocation3 + $0x1], 0 }
   0x4   :  { %16 = vsyncpa [#allocation6], 0 }
   0x5   :  { %18 = vsyncpa [#allocation6 + $0x1], 0 }
   0x6   :  { %19 = vsyncpa [#allocation4], 0 }
   0x7   :  { %21 = vsyncpa [#allocation4 + $0x1], 0 }
   0x8   :  { %22 = vsyncpa [#allocation10], 0 }
   0x9   :  { %24 = vsyncpa [#allocation10 + $0x1], 0  ;;  %s1279_s24 = smov 0   ;;  %s1281_s25 = smov 0  }
   0xa   :  { %s1283_s26 = smov 0   ;;  %s1285_s27 = smov 0  }
   0xb   :  { %s1287_s28 = smov 0   ;;  %s1289_s29 = smov 0  }
   0xc LB: > { %1617 = sst [smem:[#allocation15_spill]] %s1217_s26  ;;  %s1310_s30 = sadd.s32 4294967295, %s1229_s29   ;;  %s1229_s29 = sphi %s1289_s29, %s30_s29   ;;  %s1225_s28 = sphi %s1287_s28, %s1648_s28   ;;  %s1221_s27 = sphi %s1285_s27, %s1647_s27   ;;  %s1217_s26 = sphi %s1283_s26, %s1643_s26   ;;  %s1213_s25 = sphi %s1281_s25, %s1646_s25   ;;  %s1209_s24 = sphi %s1279_s24, %s1645_s24  }
   0xd   : > { %1618 = sst [smem:[#allocation16_spill]] %s1229_s29  ;;  %s896_s8 = sadd.s32 4294967294, %s1229_s29  }
   0xe   : > { %s42_s9 = sadd.s32 1, %s1225_s28  ;;  %s77_s10 = sadd.s32 1, %s1217_s26 }
   0xf   : > { %p44_p0 = scmp.ge.s32.totalorder %s42_s9, 2  ;;  %p84_p1 = scmp.ne.s32.totalorder %s1217_s26, %s1213_s25 }
  0x10   : > { %p85_p2 = scmp.eq.s32.totalorder %s1229_s29, 0  ;;  %p90_p3 = scmp.ne.s32.totalorder %s1213_s25, %s1209_s24 }
  0x11   : > { %s1650_s9 = smov (%p44_p0, %s42_s9), 0  ;;  %p91_p5 = scmp.eq.s32.totalorder %s1310_s30, 0 }
  0x12   : > { %1619 = sst [smem:[#allocation17_spill]] %s1650_s9  ;;  %p1322_p4 = por %p85_p2, %p84_p1 }
  0x13   : > { %s74_s12 = ssub.s32 %s1225_s28, %s1650_s9  ;;  %p224_p6 = scmp.eq.s32.totalorder %s1310_s30, 1 }
  0x14   : > { %p75_p7 = scmp.eq.s32.totalorder %s74_s12, 0  ;;  %p1330_p8 = por %p91_p5, %p90_p3 }
  0x15   : > { %p1334_p9 = por %p224_p6, %p84_p1  ;;  %p230_p10 = scmp.eq.s32.totalorder %s896_s8, 1 }
  0x16   : > { %s1621_s13 = scalar_select %p1330_p8, 1, 0 }
  0x17   : > { %s1622_s14 = scalar_select %p1334_p9, 1, 0 }
  0x18   : > { %s1339_s15 = scalar_select %p75_p7, %s1217_s26, %s77_s10  }
  0x19   : > { %p1341_p11 = por %p230_p10, %p90_p3  ;;  %p962_p13 = scmp.lt.s32.totalorder %s1229_s29, 2 }
  0x1a   : > { %1623 = sst [smem:[#allocation18_spill]] %s1339_s15  ;;  %s1348_s17 = sand.u32 1, %s1217_s26  }
  0x1b   : > { %s1624_s16 = scalar_select %p1341_p11, 1, 0 }
  0x1c   : > { %s1607_s18 = sshll.u32 %s1348_s17, 3  ;;  %s1608_s19 = sshll.u32 %s1225_s28, 7 }
  0x1d   : > { %1625 = sst [smem:[#allocation19_spill]] %s1624_s16  ;;  %p1354_p0 = pnand %p962_p13, %p1322_p4 }
  0x1e   : > { %s306_s21 = sand.u32 1, %s1229_s29   ;;  %s1627_s2 = sld [smem:[#allocation20_spill]] }
  0x1f   : > { %s1626_s20 = scalar_select %p1354_p0, 1, 0 }
  0x20   : > { %s310_s10 = scalar_lea.vmem [#allocation5], %s1607_s18  ;;  %s1372_s11 = scalar_lea.sflag [#allocation6], %s306_s21 }
  0x21   : > { %s317_s12 = sshll.u32 %s310_s10, 4  ;;  %p1378_p4 = pneg %p1354_p0  ;;  %s1369_s12 = int_to_ptr.vmem [resolvable:$true] %s317_s12 }
  0x24   : > { %s1364_s8 = scalar_lea.hbm %s1627_s2, %s1608_s19  ;;  %s1026_s10 = scalar_lea.hbm %s1627_s2, 256 }
  0x25   : > { %s1021_s9 = scalar_lea.hbm %s1364_s8, 128  ;;  %p1027_p7 = scmp.lt.u32.totalorder %s1364_s8, %s1627_s2 }
  0x26   : > { %p1022_p3 = scmp.ne.s32.totalorder %s1364_s8, %s1021_s9  ;;  %p1028_p10 = scmp.lt.u32.totalorder %s1026_s10, %s1021_s9 }
  0x27   : > { %p1030_p12 = scmp.lt.u32.totalorder %s1021_s9, %s1364_s8 }
  0x28   : > { %p1024_p5 = pnand %p1378_p4, %p1022_p3  ;;  %p1029_p13 = por %p1028_p10, %p1027_p7 }
  0x2a   : > { %p1025_p6 = pneg %p1024_p5  ;;  %p1031_p1 = por %p1030_p12, %p1029_p13 }
  0x2c   : > { %p1032_p2 = pnand %p1031_p1, %p1025_p6 }
  0x2e   : > { %1035 = shalt.err (!%p1032_p2)
}
  0x2f   : > { %s1036_s21 = scalar_lea.vmem %s1369_s12, 128  ;;  %s1231_s18 = smov [#allocation5]  }
  0x30   : > { %p1037_p3 = scmp.ne.s32.totalorder %s1369_s12, %s1036_s21  ;;  %s1041_s23 = sshll.u32 %s1231_s18, 4  ;;  %s1042_s23 = int_to_ptr.vmem [resolvable:$false] %s1041_s23 }
  0x31   : > { %s1043_s15 = scalar_lea.vmem %s1042_s23, 256  ;;  %p1044_p9 = scmp.lt.s32.totalorder %s1369_s12, %s1042_s23 }
  0x32   : > { %p1039_p5 = pnand %p1037_p3, %p1378_p4  ;;  %p1045_p8 = scmp.lt.s32.totalorder %s1043_s15, %s1036_s21 }
  0x34   : > { %p1040_p11 = pneg %p1039_p5  ;;  %p1046_p7 = por %p1045_p8, %p1044_p9 }
  0x36   : > { %p1047_p10 = pnand %p1046_p7, %p1040_p11 }
  0x38   : > { %1050 = shalt.err (!%p1047_p10)
}
  0x39   : > { %951 = dma.hbm_to_vmem [thread:$0]  (!%p1354_p0), %s1364_s8, 128, %s1369_s12, %s1372_s11  }
  0x3a   : > { %p1629_p12 = scmp.lt.s32.totalorder %s1229_s29, 3  ;;  %p1630_p1 = scmp.ge.s32.totalorder %s1229_s29, 1 }
  0x3b   : > { %s1632_s19 = sshll.u32 %s1225_s28, 7  ;;  %s1633_s23 = sshll.u32 %s1348_s17, 3 }
  0x3c   : > { %p1406_p2 = pnand %p1630_p1, %p1629_p12  ;;  %s1415_s18 = scalar_lea.hbm %s1599_s1, %s1632_s19 }
  0x3d   : > { %s292_s15 = scalar_lea.vmem [#allocation2], %s1633_s23  ;;  %s903_s8 = sshll.u32 %s1225_s28, 4 }
  0x3e   : > { %s1631_s9 = scalar_select %p1406_p2, 1, 0 }
  0x3f   : > { %s299_s2 = sshll.u32 %s292_s15, 4  ;;  %s289_s12 = scalar_lea.sflag [#allocation3], %s1348_s17  ;;  %s1419_s2 = int_to_ptr.vmem [resolvable:$true] %s299_s2 }
  0x40   : > { %s1051_s26 = scalar_lea.hbm %s1415_s18, 128  ;;  %s1056_s19 = scalar_lea.hbm %s1599_s1, 256 }
  0x41   : > { %p1052_p8 = scmp.ne.s32.totalorder %s1415_s18, %s1051_s26  ;;  %p1057_p6 = scmp.lt.u32.totalorder %s1415_s18, %s1599_s1 }
  0x42   : > { %p1058_p13 = scmp.lt.u32.totalorder %s1056_s19, %s1051_s26  ;;  %p1060_p5 = scmp.lt.u32.totalorder %s1051_s26, %s1415_s18 }
  0x43   : > { %p1054_p9 = pnand %p1052_p8, %p1378_p4 }
  0x44   : > { %p1059_p3 = por %p1058_p13, %p1057_p6 }
  0x45   : > { %p1055_p11 = pneg %p1054_p9 }
  0x46   : > { %p1061_p7 = por %p1060_p5, %p1059_p3 }
  0x48   : > { %p1062_p10 = pnand %p1061_p7, %p1055_p11 }
  0x4a   : > { %1065 = shalt.err (!%p1062_p10)
}
  0x4b   : > { %s1066_s23 = scalar_lea.vmem %s1419_s2, 128  ;;  %s1232_s29 = smov [#allocation2]  }
  0x4c   : > { %p1067_p12 = scmp.ne.s32.totalorder %s1419_s2, %s1066_s23  ;;  %s1071_s15 = sshll.u32 %s1232_s29, 4  ;;  %s1072_s15 = int_to_ptr.vmem [resolvable:$false] %s1071_s15 }
  0x4d   : > { %s1073_s16 = scalar_lea.vmem %s1072_s15, 256  ;;  %p1074_p9 = scmp.lt.s32.totalorder %s1419_s2, %s1072_s15 }
  0x4e   : > { %p1069_p1 = pnand %p1067_p12, %p1378_p4  ;;  %p1075_p2 = scmp.lt.s32.totalorder %s1073_s16, %s1066_s23 }
  0x50   : > { %p1070_p8 = pneg %p1069_p1  ;;  %p1076_p6 = por %p1075_p2, %p1074_p9 }
  0x52   : > { %p1077_p13 = pnand %p1076_p6, %p1070_p8 }
  0x54   : > { %1080 = shalt.err (!%p1077_p13)
}
  0x55   : > { %948 = dma.hbm_to_vmem [thread:$0]  (!%p1354_p0), %s1415_s18, 128, %s1419_s2, %s289_s12  }
  0x56   : > { %s1449_s19 = scalar_lea.hbm %s1601_s3, %s903_s8  ;;  %s327_s21 = scalar_lea.vmem [#allocation7], %s1348_s17 }
  0x57   : > { %s334_s23 = sshll.u32 %s327_s21, 4  ;;  %s1081_s29 = scalar_lea.hbm %s1449_s19, 16  ;;  %s335_s23 = int_to_ptr.vmem [resolvable:$true] %s334_s23 }
  0x58   : > { %p1082_p2 = scmp.ne.s32.totalorder %s1449_s19, %s1081_s29  ;;  %s1086_s18 = scalar_lea.hbm %s1601_s3, 32 }
  0x59   : > { %p1087_p5 = scmp.lt.u32.totalorder %s1449_s19, %s1601_s3  ;;  %p1088_p7 = scmp.lt.u32.totalorder %s1086_s18, %s1081_s29 }
  0x5a   : > { %p1084_p11 = pnand %p1082_p2, %p1378_p4  ;;  %p1090_p12 = scmp.lt.u32.totalorder %s1081_s29, %s1449_s19 }
  0x5b   : > { %p1089_p10 = por %p1088_p7, %p1087_p5 }
  0x5c   : > { %p1085_p3 = pneg %p1084_p11 }
  0x5d   : > { %p1091_p1 = por %p1090_p12, %p1089_p10 }
  0x5f   : > { %p1092_p8 = pnand %p1091_p1, %p1085_p3 }
  0x61   : > { %1095 = shalt.err (!%p1092_p8)
}
  0x62   : > { %s1096_s17 = scalar_lea.vmem %s335_s23, 16  ;;  %s1233_s8 = smov [#allocation7]  }
  0x63   : > { %p1097_p9 = scmp.ne.s32.totalorder %s335_s23, %s1096_s17  ;;  %s1101_s26 = sshll.u32 %s1233_s8, 4  ;;  %s1102_s26 = int_to_ptr.vmem [resolvable:$false] %s1101_s26 }
  0x64   : > { %s1103_s10 = scalar_lea.vmem %s1102_s26, 32  ;;  %p1104_p2 = scmp.lt.s32.totalorder %s335_s23, %s1102_s26 }
  0x65   : > { %p1099_p6 = pnand %p1097_p9, %p1378_p4  ;;  %p1105_p11 = scmp.lt.s32.totalorder %s1103_s10, %s1096_s17 }
  0x67   : > { %p1100_p13 = pneg %p1099_p6  ;;  %p1106_p0 = por %p1105_p11, %p1104_p2 }
  0x69   : > { %p1107_p5 = pnand %p1106_p0, %p1100_p13 }
  0x6b   : > { %1110 = shalt.err (!%p1107_p5)
}
  0x6c   : > { %p1634_p7 = scmp.ne.s32.totalorder %s1626_s20, 0  ;;  %p1635_p3 = scmp.ne.s32.totalorder %s1631_s9, 0 }
  0x6d   : > { %s1473_s22 = sand.u32 (!%p1635_p3), 1, %s1213_s25   ;;  %p1636_p0 = scmp.ne.s32.totalorder (!%p1635_p3), %s1621_s13, 0 }
  0x6e   : > { %954 = dma.hbm_to_vmem [thread:$0]  (!%p1634_p7), %s1449_s19, 16, %s335_s23, %s1372_s11  }
  0x6f   : > { %363 = sbr.rel (%p1635_p3) target bundleno = 891 (0x37b), region = 44  ;;  %s1476_s21 = sshll.u32 (!%p1635_p3), %s1473_s22, 3 }
  0x70   : > { %s366_s29 = scalar_lea.sflag (!%p1635_p3), [#allocation3], %s1473_s22  ;;  %s369_s15 = scalar_lea.vmem (!%p1635_p3), [#allocation2], %s1476_s21 }
  0x76   : > { %1192 = dma.done.wait (%p1636_p0), %s366_s29, 128  }
  0x77   : > { %1194 = vsyncadd (%p1636_p0), %s366_s29, 4294967168  ;;  %s374_s20 = sand.u32 1, %s1310_s30   ;;  %s378_s9 = scalar_lea.vmem [#allocation5], %s1476_s21 }
  0x78   : > { %s375_s11 = scalar_lea.sflag [#allocation6], %s374_s20 }
  0x79   : > { %1196 = dma.done.wait (%p1636_p0), %s375_s11, 144  }
  0x7a   : > { %1198 = vsyncadd (%p1636_p0), %s375_s11, 4294967152  ;;  %p452_p4 = scmp.lt.s32.totalorder %s1221_s27, 1  ;;  %v1234_v0 = vmov 0.0   ;;  %vm1235_vm0 = vmmov 0   ;;  %vm477_vm1 = vcmask 261120   ;;  %v475_v1 = vld [vmem:[%s369_s15] sm:$0xff]  ;;  %v559_v5 = vlaneseq }
  0x7b   : > { %925 = vmatprep.subr.mxu0 %v1234_v0  ;;  %927 = vmatprep.mubr.msk.f32.mxu0 %vm1235_vm0, %v1234_v0  ;;  %v1236_v4 = vmov 0   ;;  %s386_s18 = scalar_lea.vmem [#allocation7], %s1473_s22  ;;  %vm566_vm6 = vcmask 64512   ;;  %v476_v23 = vld [vmem:[%s378_s9] sm:$0xff]  ;;  %s451_s29 = scalar_lea.vmem [#allocation9], %s1476_s21 }
  0x7c   : > { %s453_s19 = scalar_select %p452_p4, %s1221_s27, 1  ;;  %930 = vmatprep.subr.mxu1 %v1234_v0  ;;  %932 = vmatprep.mubr.msk.f32.mxu1 %vm1235_vm0, %v1234_v0  ;;  %v554_v6 = vld [vmem:[%s386_s18] sm:$0x1]  ;;  %v560_v7 = vshrl.u32 %v559_v5, 7 }
  0x7d   : > { %926 = vmatpush3.xpose.msk.msra.mxu0 %vm477_vm1, %v475_v1  ;;  %1015 = vset.pattern.permute.xlu1 %v1236_v4  ;;  %vm555_vm2 = vcmp.gt.f32.partialorder %v554_v6, 0.0  ;;  %s917_s15 = sshll.u32 %s1221_s27, 7  ;;  %p1637_p12 = scmp.ne.s32.totalorder %s1622_s14, 0 }
  0x7e   : > { %s1492_s23 = sshll.u32 %s453_s19, 3  ;;  %1016 = vset.pattern.permute.xlu0 %v1236_v4  ;;  %v561_v8 = vsub.s32 0, %v560_v7  ;;  %v558_v9 = vsel %vm555_vm2, 1, %v1236_v4  ;;  %931 = vmatpush3.msra.mxu1 %v476_v23  ;;  %s1522_s9 = scalar_lea.hbm %s1605_s7, %s917_s15 }
  0x7f   : > { %s458_s13 = scalar_lea.vmem %s1598_s0, %s1492_s23  ;;  %s472_s17 = scalar_lea.vmem %s1603_s5, %s1492_s23 }
  0x80   : > { %v473_v2 = vld [vmem:[%s458_s13] sm:$0xff]  ;;  %v562_v10 = vrot.slane %v558_v9, %v561_v8  ;;  %s465_s10 = scalar_lea.vmem %s1602_s4, %s1492_s23  ;;  %s698_s19 = sshll.u32 %s451_s29, 4  ;;  %s699_s19 = int_to_ptr.vmem [resolvable:$true] %s698_s19 }
  0x81   : > { %v474_v3 = vmul.f32 0.17677669, %v473_v2  ;;  %v556_v11 = vld [vmem:[%s472_s17] sm:$0xff]  ;;  %s670_s23 = scalar_lea.sflag [#allocation10], %s1473_s22  ;;  %s1111_s30 = scalar_lea.vmem %s699_s19, 128 }
  0x82   : > { %vm557_vm3 = vcmp.gt.f32.partialorder %v556_v11, 0.0  ;;  %vm563_vm4 = vcmp.eq.s32.totalorder %v562_v10, 1  ;;  %v581_v16 = vld [vmem:[%s465_s10] sm:$0xff]  ;;  %p1112_p10 = scmp.ne.s32.totalorder %s699_s19, %s1111_s30  ;;  %s1237_s2 = smov [#allocation9]  }
  0x83   : > { %928 = vmatmul.mubr.msk.f32.vlgmr.msra.gmra.mrb[0].mxu0 %vm477_vm1, %v474_v3  ;;  %vm564_vm5 = vmand %vm563_vm4, %vm557_vm3  ;;  %vm582_vm7 = vcmp.gt.f32.partialorder %v581_v16, 0.0  ;;  %s1115_s13 = sshll.u32 %s1237_s2, 4  ;;  %s1116_s13 = int_to_ptr.vmem [resolvable:$false] %s1115_s13 }
  0x84   : > { %v583_v17 = vsel %vm582_vm7, 1, %v1236_v4  ;;  %p1113_p1 = pnand %p1112_p10, %p1637_p12  ;;  %s1117_s18 = scalar_lea.vmem %s1116_s13, 256 }
  0x85   : > { %585 = vperm.xlu1 %1015, %v583_v17   ;;  %p1118_p9 = scmp.lt.s32.totalorder %s699_s19, %s1116_s13  ;;  %p1119_p6 = scmp.lt.s32.totalorder %s1117_s18, %s1111_s30 }
  0x86   : > { %p1114_p8 = pneg %p1113_p1 }
  0x87   : > { %p1120_p13 = por %p1119_p6, %p1118_p9 }
  0x89   : > { %p1121_p2 = pnand %p1120_p13, %p1114_p8 }
 0x104   : > { %v586_v28 = vpop.permute.xlu1 %585 }
 0x105   : > { %vm587_vm8 = vcmp.eq.s32.totalorder %v586_v28, 1 }
 0x156   : > { %v550_v12 = vpop.f32.mrb[0].mxu0 }
 0x157   : > { %v565_v13 = vsel %vm564_vm5, %v550_v12, -inf  ;;  %v929_v14 = vpop.f32.mrb[1].mxu0 }
 0x158   : > { %v567_v15 = vsel %vm566_vm6, %v565_v13, -inf }
 0x159   : > { %568 = vmax.xlane.f32.xlu0 %v567_v15 }
 0x1e6   : > { %v569_v18 = vpop.xlane.xlu0 %568 }
 0x1e7   : > { %v570_v19 = vsub.f32 %v565_v13, %v569_v18 }
 0x1e9   : > { %v571_v20 = vmul.f32 1.442695, %v570_v19 }
 0x1eb   : > { %1017 = vpow2.f32 %v571_v20 }
 0x1f5   : > { %v1018_v21 = vpop.eup %1017 }
 0x1f6   : > { %v573_v22 = vsel %vm566_vm6, %v1018_v21, 0.0 }
 0x1f7   : > { %574 = vadd.xlane.f32.xlu0 %v573_v22 }
 0x284   : > { %v575_v24 = vpop.xlane.xlu0 %574 }
 0x285   : > { %1019 = vrcp.f32 %v575_v24 }
 0x28f   : > { %v1020_v25 = vpop.eup %1019 }
 0x290   : > { %v577_v26 = vmul.f32 %v1020_v25, %v575_v24 }
 0x292   : > { %v578_v27 = vsub.f32 2.0, %v577_v26 }
 0x294   : > { %v579_v29 = vmul.f32 %v1020_v25, %v578_v27 }
 0x296   : > { %v580_v30 = vmul.f32 %v1018_v21, %v579_v29 }
 0x298   : > { %v588_v31 = vsel %vm587_vm8, %v580_v30, 0.0 }
 0x299   : > { %663 = vst.msk [vmem:[%s451_s29] sm:$0xff] %vm566_vm6, %v588_v31  ;;  %933 = vmatmul.mubr.msk.f32.vlgmr.msra.gmra.mrb[0].mxu1 %vm566_vm6, %v588_v31 }
 0x29a   : > { %1124 = shalt.err (!%p1121_p2)
}
 0x29b   : > { %s1125_s12 = scalar_lea.hbm %s1522_s9, 128  ;;  %s1129_s8 = scalar_lea.hbm %s1605_s7, 256 }
 0x29c   : > { %p1126_p11 = scmp.ne.s32.totalorder %s1522_s9, %s1125_s12  ;;  %p1130_p3 = scmp.lt.u32.totalorder %s1522_s9, %s1605_s7 }
 0x29d   : > { %p1131_p0 = scmp.lt.u32.totalorder %s1129_s8, %s1125_s12  ;;  %p1133_p10 = scmp.lt.u32.totalorder %s1125_s12, %s1522_s9 }
 0x29e   : > { %p1127_p5 = pnand %p1126_p11, %p1637_p12 }
 0x29f   : > { %p1132_p4 = por %p1131_p0, %p1130_p3 }
 0x2a0   : > { %p1128_p7 = pneg %p1127_p5 }
 0x2a1   : > { %p1134_p1 = por %p1133_p10, %p1132_p4 }
 0x2a3   : > { %p1135_p8 = pnand %p1134_p1, %p1128_p7 }
 0x2a5   : > { %1138 = shalt.err (!%p1135_p8)
}
 0x2a6   : > { %942 = dma.vmem_to_hbm [thread:$0]  (%p1637_p12), %s699_s19, 128, %s1522_s9, %s670_s23  }
 0x2a7   : > { %s444_s29 = scalar_lea.vmem [#allocation8], %s1476_s21  ;;  %s1548_s2 = scalar_lea.hbm %s1604_s6, %s917_s15 }
 0x2a8   : > { %s684_s20 = sshll.u32 %s444_s29, 4  ;;  %s665_s13 = scalar_lea.sflag [#allocation4], %s1473_s22  ;;  %s1550_s20 = int_to_ptr.vmem [resolvable:$true] %s684_s20 }
 0x2a9   : > { %s1139_s18 = scalar_lea.vmem %s1550_s20, 128  ;;  %s1238_s27 = smov [#allocation8]  }
 0x2aa   : > { %p1140_p9 = scmp.ne.s32.totalorder %s1550_s20, %s1139_s18  ;;  %s1143_s21 = sshll.u32 %s1238_s27, 4  ;;  %s1144_s21 = int_to_ptr.vmem [resolvable:$false] %s1143_s21 }
 0x2ab   : > { %s1145_s15 = scalar_lea.vmem %s1144_s21, 256  ;;  %p1146_p2 = scmp.lt.s32.totalorder %s1550_s20, %s1144_s21 }
 0x2ac   : > { %p1141_p6 = pnand %p1140_p9, %p1637_p12  ;;  %p1147_p11 = scmp.lt.s32.totalorder %s1145_s15, %s1139_s18 }
 0x2ae   : > { %p1142_p13 = pneg %p1141_p6  ;;  %p1148_p5 = por %p1147_p11, %p1146_p2 }
 0x2b0   : > { %p1149_p7 = pnand %p1148_p5, %p1142_p13 }
 0x36c   : > { %v658_v32 = vpop.f32.mrb[0].mxu1 }
 0x36d   : > { %662 = vst.msk [vmem:[%s444_s29] sm:$0xff] %vm477_vm1, %v658_v32  ;;  %v934_v33 = vpop.f32.mrb[1].mxu1 }
 0x36e   : > { %1152 = shalt.err (!%p1149_p7)
}
 0x36f   : > { %s1153_s22 = scalar_lea.hbm %s1548_s2, 128  ;;  %s1157_s23 = scalar_lea.hbm %s1604_s6, 256 }
 0x370   : > { %p1154_p3 = scmp.ne.s32.totalorder %s1548_s2, %s1153_s22  ;;  %p1158_p10 = scmp.lt.u32.totalorder %s1548_s2, %s1604_s6 }
 0x371   : > { %p1159_p1 = scmp.lt.u32.totalorder %s1157_s23, %s1153_s22  ;;  %p1161_p9 = scmp.lt.u32.totalorder %s1153_s22, %s1548_s2 }
 0x372   : > { %p1155_p0 = pnand %p1154_p3, %p1637_p12 }
 0x373   : > { %p1160_p8 = por %p1159_p1, %p1158_p10 }
 0x374   : > { %p1156_p4 = pneg %p1155_p0 }
 0x375   : > { %p1162_p6 = por %p1161_p9, %p1160_p8 }
 0x377   : > { %p1163_p13 = pnand %p1162_p6, %p1156_p4 }
 0x379   : > { %1166 = shalt.err (!%p1163_p13)
}
 0x37a   : > { %941 = dma.vmem_to_hbm [thread:$0]  (%p1637_p12), %s1550_s20, 128, %s1548_s2, %s665_s13  }
 0x37b PF: > { %s1638_s17 = sld [smem:[#allocation19_spill]]  ;;  %s1639_s8 = sld [smem:[#allocation16_spill]] }
 0x37c   : > { %s710_s26 = sand.u32 1, %s1209_s24  }
 0x37d   : > { %s711_s10 = scalar_lea.sflag [#allocation4], %s710_s26 }
 0x381   : > { %p1640_p2 = scmp.ne.s32.totalorder %s1638_s17, 0  ;;  %p1641_p11 = scmp.ge.s32.totalorder %s1639_s8, 2 }
 0x383   : > { %p956_p5 = pnand %p1641_p11, %p1640_p2 }
 0x385   : > { %1200 = dma.done.wait (!%p956_p5), %s711_s10, 128  }
 0x386   : > { %1202 = vsyncadd (!%p956_p5), %s711_s10, 4294967168  ;;  %s720_s29 = scalar_lea.sflag [#allocation10], %s710_s26 }
 0x387   : > { %1204 = dma.done.wait (!%p956_p5), %s720_s29, 128  }
 0x388   : > { %1206 = vsyncadd (!%p956_p5), %s720_s29, 4294967168  ;;  %s30_s29 = sadd.s32 1, %s1639_s8   ;;  %s1642_s14 = sld [smem:[#allocation15_spill]] }
 0x389   : > { %p27_p7 = scmp.ge.s32.totalorder %s30_s29, 4   ;;  %s1643_s26 = sld [smem:[#allocation18_spill]] }
 0x38a   : > { %s1644_s20 = sld [smem:[#allocation17_spill]]  ;;  %s1645_s24 = smov %s1213_s25 }
 0x38b   : > { %s1647_s27 = smov %s1225_s28  ;;  %29 = sbr.rel (!%p27_p7) target bundleno = 12 (0xc), region = 139 }
 0x38e   : > { %s1646_s25 = smov %s1642_s14 }
 0x390   : > { %s1648_s28 = smov %s1644_s20 }
 0x392   :  { %725 = vsyncpa [#allocation3], 1 }
 0x393   :  { %727 = vsyncpa [#allocation3 + $0x1], 1 }
 0x394   :  { %728 = vsyncpa [#allocation6], 1 }
 0x395   :  { %730 = vsyncpa [#allocation6 + $0x1], 1 }
 0x396   :  { %731 = vsyncpa [#allocation4], 1 }
 0x397   :  { %733 = vsyncpa [#allocation4 + $0x1], 1 }
 0x398   :  { %734 = vsyncpa [#allocation10], 1 }
 0x399   :  { %736 = vsyncpa [#allocation10 + $0x1], 1 }

</bundles_post_ra>
